<compile_context>
chip_gen: v7x
topology: tpu7x:2x2x1
jax: 0.10.0
libtpu: 0.0.40
codegen_flags: <defaults>
</compile_context>

<pallas_src>
import functools

import numpy as np
import jax
import jax.numpy as jnp
from jax import lax
from jax.experimental import pallas as pl
from jax.experimental.pallas import tpu as pltpu


# ---------------------------------------------------------------------------
# Host-side: fold inference-mode BatchNorm1d into the preceding Linear.
# ---------------------------------------------------------------------------
def _fold_linear_bn(w, b, gamma, beta, mean, var, eps=1e-5,
                    weight_dtype=jnp.bfloat16):
    """PyTorch Linear: y = x @ W.T + b, W is (out, in).

    Returns W_f of shape (in, out) (cast to `weight_dtype` for single-pass MXU)
    and b_f of shape (1, out) in f32, so the kernel computes x @ W_f + b_f with
    a lane-dense output axis.
    """
    s = gamma / jnp.sqrt(var + eps)                  # (out,)
    w_f = (w * s[:, None]).T                         # (in, out)
    b_f = (b * s + beta - mean * s)[None, :]         # (1, out)
    return w_f.astype(weight_dtype), b_f.astype(jnp.float32)


# ---------------------------------------------------------------------------
# Fused kernel: embed MLPs + L2 normalize + batched cossim + mask/min/ReLU.
# ---------------------------------------------------------------------------
def _relation_matching_kernel(lang_ref, vis_ref, mask_ref,
                              wl1_ref, bl1_ref, wl2_ref, bl2_ref,
                              wv1_ref, bv1_ref, wv2_ref, bv2_ref,
                              out_ref, *, min_value):
    # lang_ref: (TB, S,  Dl)   raw language features for this batch tile
    # vis_ref:  (TB, NC, Dv)   raw visual features (NC = n * num_cxt)
    # mask_ref: (TB, 1,  NC)   float mask
    # w*_ref:   (Din, H) bf16 folded Linear+BN weights (resident across grid)
    # b*_ref:   (1, H)   f32 folded biases
    # out_ref:  (TB, S,  NC)
    tb, num_seq, _ = lang_ref.shape
    nc = vis_ref.shape[1]

    def embed(x2d, w1, b1, w2, b2):
        # Linear(+BN folded) -> ReLU -> Linear(+BN folded) -> L2 normalize.
        # MXU operands in bf16 (single native pass); accumulate + all
        # elementwise math in f32.
        h = jnp.dot(x2d.astype(w1.dtype), w1,
                    preferred_element_type=jnp.float32,
                    precision=lax.Precision.DEFAULT) + b1
        h = jnp.maximum(h, 0.0)                                   # ReLU
        e = jnp.dot(h.astype(w2.dtype), w2,
                    preferred_element_type=jnp.float32,
                    precision=lax.Precision.DEFAULT) + b2
        # F.normalize(p=2, dim=1): x / max(||x||, 1e-12)
        #   == x * rsqrt(max(||x||^2, 1e-24))   (rsqrt runs on the EUP slot)
        ss = jnp.sum(e * e, axis=-1, keepdims=True)
        return e * lax.rsqrt(jnp.maximum(ss, 1e-24))

    lang = embed(lang_ref[...].reshape(tb * num_seq, -1),
                 wl1_ref[...], bl1_ref[...], wl2_ref[...], bl2_ref[...])
    vis = embed(vis_ref[...].reshape(tb * nc, -1),
                wv1_ref[...], bv1_ref[...], wv2_ref[...], bv2_ref[...])

    lang = lang.reshape(tb, num_seq, -1)          # (TB, S,  H) normalized
    vis = vis.reshape(tb, nc, -1)                 # (TB, NC, H) normalized

    # Batched cosine similarity: lang @ vis^T per batch (contract on H).
    sim = jnp.einsum("bqd,bkd->bqk",
                     lang.astype(jnp.bfloat16), vis.astype(jnp.bfloat16),
                     preferred_element_type=jnp.float32,
                     precision=lax.Precision.DEFAULT)             # (TB, S, NC)

    mask = mask_ref[...]                          # (TB, 1, NC)
    masked = jnp.where(mask == 0.0, jnp.float32(min_value), mask * sim)
    out_ref[...] = jnp.maximum(masked, 0.0)       # ReLU


# ---------------------------------------------------------------------------
# Module wrapper.
# ---------------------------------------------------------------------------
def relation_matching(vis_input, lang_input, masks, params, min_value=-1.0,
                      batch_tile=8):
    bs, n, num_cxt, vis_dim = vis_input.shape
    num_seq, lang_dim = lang_input.shape[1], lang_input.shape[2]
    jemb = params["vis"]["w2"].shape[0]
    nc = n * num_cxt

    p_vis, p_lang = params["vis"], params["lang"]
    wv1, bv1 = _fold_linear_bn(p_vis["w1"], p_vis["b1"], p_vis["g1"],
                               p_vis["be1"], p_vis["m1"], p_vis["v1"])
    wv2, bv2 = _fold_linear_bn(p_vis["w2"], p_vis["b2"], p_vis["g2"],
                               p_vis["be2"], p_vis["m2"], p_vis["v2"])
    wl1, bl1 = _fold_linear_bn(p_lang["w1"], p_lang["b1"], p_lang["g1"],
                               p_lang["be1"], p_lang["m1"], p_lang["v1"])
    wl2, bl2 = _fold_linear_bn(p_lang["w2"], p_lang["b2"], p_lang["g2"],
                               p_lang["be2"], p_lang["m2"], p_lang["v2"])

    # Metadata-only reshapes (contiguous): no extra HBM traffic.
    vis3d = vis_input.reshape(bs, nc, vis_dim)
    mask3d = masks.reshape(bs, 1, nc).astype(jnp.float32)

    # Batch tile: large enough to amortize per-grid-step overhead, but keep
    # >= 2 parallel grid steps when bs >= 2 so both v7x TensorCores get work.
    # (If bs == 1 the grid degenerates to a single step; a second parallel
    #  axis over seq/context tiles could be added for very large per-batch
    #  shapes, not needed at these sizes.)
    tb = min(batch_tile, max(1, bs // 2)) if bs > 1 else 1
    while bs % tb:
        tb -= 1

    cossim = pl.pallas_call(
        functools.partial(_relation_matching_kernel,
                          min_value=float(min_value)),
        out_shape=jax.ShapeDtypeStruct((bs, num_seq, nc), jnp.float32),
        grid_spec=pl.GridSpec(
            grid=(bs // tb,),
            in_specs=[
                pl.BlockSpec((tb, num_seq, lang_dim), lambda b: (b, 0, 0)),
                pl.BlockSpec((tb, nc, vis_dim), lambda b: (b, 0, 0)),
                pl.BlockSpec((tb, 1, nc), lambda b: (b, 0, 0)),
                # Weights/biases: constant block index -> resident in VMEM.
                pl.BlockSpec((lang_dim, jemb), lambda b: (0, 0)),
                pl.BlockSpec((1, jemb), lambda b: (0, 0)),
                pl.BlockSpec((jemb, jemb), lambda b: (0, 0)),
                pl.BlockSpec((1, jemb), lambda b: (0, 0)),
                pl.BlockSpec((vis_dim, jemb), lambda b: (0, 0)),
                pl.BlockSpec((1, jemb), lambda b: (0, 0)),
                pl.BlockSpec((jemb, jemb), lambda b: (0, 0)),
                pl.BlockSpec((1, jemb), lambda b: (0, 0)),
            ],
            out_specs=pl.BlockSpec((tb, num_seq, nc), lambda b: (b, 0, 0)),
        ),
        compiler_params=pltpu.CompilerParams(
            dimension_semantics=("parallel",)),
    )(lang_input, vis3d, mask3d,
      wl1, bl1, wl2, bl2, wv1, bv1, wv2, bv2)

    return cossim.reshape(bs, num_seq, n, num_cxt)


# ---------------------------------------------------------------------------
# Pure-JAX reference (explicit BN, un-folded, HIGHEST-precision matmuls).
# ---------------------------------------------------------------------------
def _reference(vis_input, lang_input, masks, params, min_value=-1.0):
    eps = 1e-5
    hp = lax.Precision.HIGHEST

    def mlp(x, p):
        h = jnp.dot(x, p["w1"].T, precision=hp) + p["b1"]
        h = (h - p["m1"]) / jnp.sqrt(p["v1"] + eps) * p["g1"] + p["be1"]
        h = jnp.maximum(h, 0.0)
        e = jnp.dot(h, p["w2"].T, precision=hp) + p["b2"]
        e = (e - p["m2"]) / jnp.sqrt(p["v2"] + eps) * p["g2"] + p["be2"]
        norm = jnp.sqrt(jnp.sum(e * e, axis=-1, keepdims=True))
        return e / jnp.maximum(norm, 1e-12)

    bs, n, num_cxt, _ = vis_input.shape
    num_seq = lang_input.shape[1]
    v = mlp(vis_input.reshape(bs * n * num_cxt, -1), params["vis"])
    l = mlp(lang_input.reshape(bs * num_seq, -1), params["lang"])
    v = v.reshape(bs, n * num_cxt, -1)
    l = l.reshape(bs, num_seq, -1)
    cos = jnp.einsum("bsh,bkh->bsk", l, v,
                     precision=hp).reshape(bs, num_seq, n, num_cxt)
    m = jnp.broadcast_to(masks[:, None, :, :].astype(jnp.float32), cos.shape)
    cos = jnp.where(m == 0.0, jnp.float32(min_value), m * cos)
    return jnp.maximum(cos, 0.0)


def _make_branch_params(key, din, h):
    ks = jax.random.split(key, 12)
    return {
        "w1": jax.random.normal(ks[0], (h, din), jnp.float32) / np.sqrt(din),
        "b1": jax.random.normal(ks[1], (h,), jnp.float32) * 0.1,
        "g1": jax.random.uniform(ks[2], (h,), jnp.float32, 0.5, 1.5),
        "be1": jax.random.normal(ks[3], (h,), jnp.float32) * 0.1,
        "m1": jax.random.normal(ks[4], (h,), jnp.float32) * 0.1,
        "v1": jax.random.uniform(ks[5], (h,), jnp.float32, 0.5, 1.5),
        "w2": jax.random.normal(ks[6], (h, h), jnp.float32) / np.sqrt(h),
        "b2": jax.random.normal(ks[7], (h,), jnp.float32) * 0.1,
        "g2": jax.random.uniform(ks[8], (h,), jnp.float32, 0.5, 1.5),
        "be2": jax.random.normal(ks[9], (h,), jnp.float32) * 0.1,
        "m2": jax.random.normal(ks[10], (h,), jnp.float32) * 0.1,
        "v2": jax.random.uniform(ks[11], (h,), jnp.float32, 0.5, 1.5),
    }


if __name__ == "__main__":
    bs, n, num_cxt, num_seq = 2, 8, 4, 8
    vis_dim, lang_dim, jemb_dim = 64, 96, 128
    min_value = -1.0

    key = jax.random.PRNGKey(0)
    k_vis, k_lang, k_mask, k_pvis, k_plang = jax.random.split(key, 5)

    vis_input = jax.random.normal(k_vis, (bs, n, num_cxt, vis_dim), jnp.float32)
    lang_input = jax.random.normal(k_lang, (bs, num_seq, lang_dim), jnp.float32)
    masks = jax.random.randint(
        k_mask, (bs, n, num_cxt), 0, 2, dtype=jnp.int32).astype(jnp.float32)

    params = {
        "vis": _make_branch_params(k_pvis, vis_dim, jemb_dim),
        "lang": _make_branch_params(k_plang, lang_dim, jemb_dim),
    }

    out = relation_matching(vis_input, lang_input, masks, params, min_value)
    jax.block_until_ready(out)

    ref = _reference(vis_input, lang_input, masks, params, min_value)
    # Kernel runs the MXU in single-pass bf16 (operand rounding ~2^-9 relative,
    # compounded over three chained 64-128 term contractions); reference is
    # full-f32 (HIGHEST).  Expected per-entry deviation of the cosine scores is
    # a few 1e-3, so 1e-2 gives margin while still catching structural bugs
    # (wrong fold, masking, normalization, transposed weights, ...).
    np.testing.assert_allclose(np.asarray(out), np.asarray(ref),
                               rtol=1e-2, atol=1e-2)

    print("KERNEL_OK")
</pallas_src>

<mosaic_0001>
module attributes {stable_mosaic.version = 11 : i64} {
  func.func @_relation_matching_kernel(%arg0: i32, %arg1: memref<1x8x96xf32, #tpu.memory_space<vmem>>, %arg2: memref<1x32x64xf32, #tpu.memory_space<vmem>>, %arg3: memref<1x1x32xf32, #tpu.memory_space<vmem>>, %arg4: memref<96x128xbf16, #tpu.memory_space<vmem>>, %arg5: memref<1x128xf32, #tpu.memory_space<vmem>>, %arg6: memref<128x128xbf16, #tpu.memory_space<vmem>>, %arg7: memref<1x128xf32, #tpu.memory_space<vmem>>, %arg8: memref<64x128xbf16, #tpu.memory_space<vmem>>, %arg9: memref<1x128xf32, #tpu.memory_space<vmem>>, %arg10: memref<128x128xbf16, #tpu.memory_space<vmem>>, %arg11: memref<1x128xf32, #tpu.memory_space<vmem>>, %arg12: memref<1x8x32xf32, #tpu.memory_space<vmem>>) attributes {dimension_semantics = [#tpu.dimension_semantics<parallel>], iteration_bounds = array<i64: 2>, scalar_prefetch = 0 : i64, scratch_operands = 0 : i64, tpu.core_type = #tpu.core_type<tc>, window_params = [{transform_indices = @transform_0, window_bounds = array<i64: 1, 8, 96>}, {transform_indices = @transform_1, window_bounds = array<i64: 1, 32, 64>}, {transform_indices = @transform_2, window_bounds = array<i64: 1, 1, 32>}, {pipeline_mode = #tpu.pipeline_mode<synchronous>, transform_indices = @transform_3, window_bounds = array<i64: 96, 128>}, {pipeline_mode = #tpu.pipeline_mode<synchronous>, transform_indices = @transform_4, window_bounds = array<i64: 1, 128>}, {pipeline_mode = #tpu.pipeline_mode<synchronous>, transform_indices = @transform_5, window_bounds = array<i64: 128, 128>}, {pipeline_mode = #tpu.pipeline_mode<synchronous>, transform_indices = @transform_6, window_bounds = array<i64: 1, 128>}, {pipeline_mode = #tpu.pipeline_mode<synchronous>, transform_indices = @transform_7, window_bounds = array<i64: 64, 128>}, {pipeline_mode = #tpu.pipeline_mode<synchronous>, transform_indices = @transform_8, window_bounds = array<i64: 1, 128>}, {pipeline_mode = #tpu.pipeline_mode<synchronous>, transform_indices = @transform_9, window_bounds = array<i64: 128, 128>}, {pipeline_mode = #tpu.pipeline_mode<synchronous>, transform_indices = @transform_10, window_bounds = array<i64: 1, 128>}, {transform_indices = @transform_11, window_bounds = array<i64: 1, 8, 32>}]} {
    %c0 = arith.constant 0 : index
    %c0_0 = arith.constant 0 : index
    %c0_1 = arith.constant 0 : index
    %0 = vector.load %arg1[%c0, %c0_0, %c0_1] : memref<1x8x96xf32, #tpu.memory_space<vmem>>, vector<1x8x96xf32>
    %1 = vector.shape_cast %0 : vector<1x8x96xf32> to vector<8x96xf32>
    %c0_2 = arith.constant 0 : index
    %c0_3 = arith.constant 0 : index
    %2 = vector.load %arg4[%c0_2, %c0_3] : memref<96x128xbf16, #tpu.memory_space<vmem>>, vector<96x128xbf16>
    %c0_4 = arith.constant 0 : index
    %c0_5 = arith.constant 0 : index
    %3 = vector.load %arg5[%c0_4, %c0_5] : memref<1x128xf32, #tpu.memory_space<vmem>>, vector<1x128xf32>
    %c0_6 = arith.constant 0 : index
    %c0_7 = arith.constant 0 : index
    %4 = vector.load %arg6[%c0_6, %c0_7] : memref<128x128xbf16, #tpu.memory_space<vmem>>, vector<128x128xbf16>
    %c0_8 = arith.constant 0 : index
    %c0_9 = arith.constant 0 : index
    %5 = vector.load %arg7[%c0_8, %c0_9] : memref<1x128xf32, #tpu.memory_space<vmem>>, vector<1x128xf32>
    %6 = arith.truncf %1 : vector<8x96xf32> to vector<8x96xbf16>
    %cst = arith.constant dense<0.000000e+00> : vector<8x128xf32>
    %7 = tpu.matmul %6, %2, %cst {dimension_numbers = #tpu.dot_dimension_numbers<[1], [0], [0], [1], [0, 0, 1, 1], [], []>} : vector<8x96xbf16>, vector<96x128xbf16>, vector<8x128xf32> -> vector<8x128xf32>
    %8 = vector.broadcast %3 : vector<1x128xf32> to vector<8x128xf32>
    %9 = arith.addf %7, %8 : vector<8x128xf32>
    %cst_10 = arith.constant 0.000000e+00 : f32
    %10 = vector.broadcast %cst_10 : f32 to vector<8x128xf32>
    %11 = arith.maximumf %9, %10 : vector<8x128xf32>
    %12 = arith.truncf %11 : vector<8x128xf32> to vector<8x128xbf16>
    %cst_11 = arith.constant dense<0.000000e+00> : vector<8x128xf32>
    %13 = tpu.matmul %12, %4, %cst_11 {dimension_numbers = #tpu.dot_dimension_numbers<[1], [0], [0], [1], [0, 0, 1, 1], [], []>} : vector<8x128xbf16>, vector<128x128xbf16>, vector<8x128xf32> -> vector<8x128xf32>
    %14 = vector.broadcast %5 : vector<1x128xf32> to vector<8x128xf32>
    %15 = arith.addf %13, %14 : vector<8x128xf32>
    %16 = arith.mulf %15, %15 : vector<8x128xf32>
    %cst_12 = arith.constant dense<0.000000e+00> : vector<8xf32>
    %17 = vector.multi_reduction <add>, %16, %cst_12 [1] : vector<8x128xf32> to vector<8xf32>
    %18 = vector.shape_cast %17 : vector<8xf32> to vector<8x1xf32>
    %cst_13 = arith.constant 1.000000e-24 : f32
    %19 = vector.broadcast %cst_13 : f32 to vector<8x1xf32>
    %20 = arith.maximumf %18, %19 : vector<8x1xf32>
    %21 = math.rsqrt %20 : vector<8x1xf32>
    %22 = vector.broadcast %21 : vector<8x1xf32> to vector<8x128xf32>
    %23 = arith.mulf %15, %22 : vector<8x128xf32>
    %c0_14 = arith.constant 0 : index
    %c0_15 = arith.constant 0 : index
    %c0_16 = arith.constant 0 : index
    %24 = vector.load %arg2[%c0_14, %c0_15, %c0_16] : memref<1x32x64xf32, #tpu.memory_space<vmem>>, vector<1x32x64xf32>
    %25 = vector.shape_cast %24 : vector<1x32x64xf32> to vector<32x64xf32>
    %c0_17 = arith.constant 0 : index
    %c0_18 = arith.constant 0 : index
    %26 = vector.load %arg8[%c0_17, %c0_18] : memref<64x128xbf16, #tpu.memory_space<vmem>>, vector<64x128xbf16>
    %c0_19 = arith.constant 0 : index
    %c0_20 = arith.constant 0 : index
    %27 = vector.load %arg9[%c0_19, %c0_20] : memref<1x128xf32, #tpu.memory_space<vmem>>, vector<1x128xf32>
    %c0_21 = arith.constant 0 : index
    %c0_22 = arith.constant 0 : index
    %28 = vector.load %arg10[%c0_21, %c0_22] : memref<128x128xbf16, #tpu.memory_space<vmem>>, vector<128x128xbf16>
    %c0_23 = arith.constant 0 : index
    %c0_24 = arith.constant 0 : index
    %29 = vector.load %arg11[%c0_23, %c0_24] : memref<1x128xf32, #tpu.memory_space<vmem>>, vector<1x128xf32>
    %30 = arith.truncf %25 : vector<32x64xf32> to vector<32x64xbf16>
    %cst_25 = arith.constant dense<0.000000e+00> : vector<32x128xf32>
    %31 = tpu.matmul %30, %26, %cst_25 {dimension_numbers = #tpu.dot_dimension_numbers<[1], [0], [0], [1], [0, 0, 1, 1], [], []>} : vector<32x64xbf16>, vector<64x128xbf16>, vector<32x128xf32> -> vector<32x128xf32>
    %32 = vector.broadcast %27 : vector<1x128xf32> to vector<32x128xf32>
    %33 = arith.addf %31, %32 : vector<32x128xf32>
    %cst_26 = arith.constant 0.000000e+00 : f32
    %34 = vector.broadcast %cst_26 : f32 to vector<32x128xf32>
    %35 = arith.maximumf %33, %34 : vector<32x128xf32>
    %36 = arith.truncf %35 : vector<32x128xf32> to vector<32x128xbf16>
    %cst_27 = arith.constant dense<0.000000e+00> : vector<32x128xf32>
    %37 = tpu.matmul %36, %28, %cst_27 {dimension_numbers = #tpu.dot_dimension_numbers<[1], [0], [0], [1], [0, 0, 1, 1], [], []>} : vector<32x128xbf16>, vector<128x128xbf16>, vector<32x128xf32> -> vector<32x128xf32>
    %38 = vector.broadcast %29 : vector<1x128xf32> to vector<32x128xf32>
    %39 = arith.addf %37, %38 : vector<32x128xf32>
    %40 = arith.mulf %39, %39 : vector<32x128xf32>
    %cst_28 = arith.constant dense<0.000000e+00> : vector<32xf32>
    %41 = vector.multi_reduction <add>, %40, %cst_28 [1] : vector<32x128xf32> to vector<32xf32>
    %42 = vector.shape_cast %41 : vector<32xf32> to vector<32x1xf32>
    %cst_29 = arith.constant 1.000000e-24 : f32
    %43 = vector.broadcast %cst_29 : f32 to vector<32x1xf32>
    %44 = arith.maximumf %42, %43 : vector<32x1xf32>
    %45 = math.rsqrt %44 : vector<32x1xf32>
    %46 = vector.broadcast %45 : vector<32x1xf32> to vector<32x128xf32>
    %47 = arith.mulf %39, %46 : vector<32x128xf32>
    %48 = vector.shape_cast %23 : vector<8x128xf32> to vector<1x8x128xf32>
    %49 = vector.shape_cast %47 : vector<32x128xf32> to vector<1x32x128xf32>
    %50 = arith.truncf %48 : vector<1x8x128xf32> to vector<1x8x128xbf16>
    %51 = arith.truncf %49 : vector<1x32x128xf32> to vector<1x32x128xbf16>
    "tpu.trace_start"() <{level = 10 : i32, message = "bqd,bkd->bqk"}> : () -> ()
    %cst_30 = arith.constant dense<0.000000e+00> : vector<1x8x32xf32>
    %52 = tpu.matmul %50, %51, %cst_30 {dimension_numbers = #tpu.dot_dimension_numbers<[2], [2], [1], [1], [0, 0, 0, 1, 1, 1], [0], [0]>} : vector<1x8x128xbf16>, vector<1x32x128xbf16>, vector<1x8x32xf32> -> vector<1x8x32xf32>
    "tpu.trace_stop"() : () -> ()
    %c0_31 = arith.constant 0 : index
    %c0_32 = arith.constant 0 : index
    %c0_33 = arith.constant 0 : index
    %53 = vector.load %arg3[%c0_31, %c0_32, %c0_33] : memref<1x1x32xf32, #tpu.memory_space<vmem>>, vector<1x1x32xf32>
    %cst_34 = arith.constant 0.000000e+00 : f32
    %54 = vector.broadcast %cst_34 : f32 to vector<1x1x32xf32>
    %55 = arith.cmpf oeq, %53, %54 : vector<1x1x32xf32>
    %56 = vector.broadcast %53 : vector<1x1x32xf32> to vector<1x8x32xf32>
    %57 = arith.mulf %56, %52 : vector<1x8x32xf32>
    %cst_35 = arith.constant -1.000000e+00 : f32
    %58 = vector.shape_cast %55 : vector<1x1x32xi1> to vector<1x1x32xi1>
    %59 = vector.broadcast %58 : vector<1x1x32xi1> to vector<1x8x32xi1>
    %60 = vector.broadcast %cst_35 : f32 to vector<1x8x32xf32>
    %61 = arith.select %59, %60, %57 : vector<1x8x32xi1>, vector<1x8x32xf32>
    %cst_36 = arith.constant 0.000000e+00 : f32
    %62 = vector.broadcast %cst_36 : f32 to vector<1x8x32xf32>
    %63 = arith.maximumf %61, %62 : vector<1x8x32xf32>
    %c0_37 = arith.constant 0 : index
    %c0_38 = arith.constant 0 : index
    %c0_39 = arith.constant 0 : index
    %64 = vector.load %arg12[%c0_37, %c0_38, %c0_39] : memref<1x8x32xf32, #tpu.memory_space<vmem>>, vector<1x8x32xf32>
    tpu.vector_store %arg12[%c0_37, %c0_38, %c0_39], %63 {strides = array<i32>} : memref<1x8x32xf32, #tpu.memory_space<vmem>>, vector<1x8x32xf32>,
    return
  }
  func.func @transform_0(%arg0: i32) -> (i32, i32, i32) {
    %c0_i32 = arith.constant 0 : i32
    %c0_i32_0 = arith.constant 0 : i32
    %c0_i32_1 = arith.constant 0 : i32
    return %arg0, %c0_i32, %c0_i32_0 : i32, i32, i32
  }
  func.func @transform_1(%arg0: i32) -> (i32, i32, i32) {
    %c0_i32 = arith.constant 0 : i32
    %c0_i32_0 = arith.constant 0 : i32
    %c0_i32_1 = arith.constant 0 : i32
    return %arg0, %c0_i32, %c0_i32_0 : i32, i32, i32
  }
  func.func @transform_2(%arg0: i32) -> (i32, i32, i32) {
    %c0_i32 = arith.constant 0 : i32
    %c0_i32_0 = arith.constant 0 : i32
    %c0_i32_1 = arith.constant 0 : i32
    return %arg0, %c0_i32, %c0_i32_0 : i32, i32, i32
  }
  func.func @transform_3(%arg0: i32) -> (i32, i32) {
    %c0_i32 = arith.constant 0 : i32
    %c0_i32_0 = arith.constant 0 : i32
    %c0_i32_1 = arith.constant 0 : i32
    return %c0_i32, %c0_i32_0 : i32, i32
  }
  func.func @transform_4(%arg0: i32) -> (i32, i32) {
    %c0_i32 = arith.constant 0 : i32
    %c0_i32_0 = arith.constant 0 : i32
    %c0_i32_1 = arith.constant 0 : i32
    return %c0_i32, %c0_i32_0 : i32, i32
  }
  func.func @transform_5(%arg0: i32) -> (i32, i32) {
    %c0_i32 = arith.constant 0 : i32
    %c0_i32_0 = arith.constant 0 : i32
    %c0_i32_1 = arith.constant 0 : i32
    return %c0_i32, %c0_i32_0 : i32, i32
  }
  func.func @transform_6(%arg0: i32) -> (i32, i32) {
    %c0_i32 = arith.constant 0 : i32
    %c0_i32_0 = arith.constant 0 : i32
    %c0_i32_1 = arith.constant 0 : i32
    return %c0_i32, %c0_i32_0 : i32, i32
  }
  func.func @transform_7(%arg0: i32) -> (i32, i32) {
    %c0_i32 = arith.constant 0 : i32
    %c0_i32_0 = arith.constant 0 : i32
    %c0_i32_1 = arith.constant 0 : i32
    return %c0_i32, %c0_i32_0 : i32, i32
  }
  func.func @transform_8(%arg0: i32) -> (i32, i32) {
    %c0_i32 = arith.constant 0 : i32
    %c0_i32_0 = arith.constant 0 : i32
    %c0_i32_1 = arith.constant 0 : i32
    return %c0_i32, %c0_i32_0 : i32, i32
  }
  func.func @transform_9(%arg0: i32) -> (i32, i32) {
    %c0_i32 = arith.constant 0 : i32
    %c0_i32_0 = arith.constant 0 : i32
    %c0_i32_1 = arith.constant 0 : i32
    return %c0_i32, %c0_i32_0 : i32, i32
  }
  func.func @transform_10(%arg0: i32) -> (i32, i32) {
    %c0_i32 = arith.constant 0 : i32
    %c0_i32_0 = arith.constant 0 : i32
    %c0_i32_1 = arith.constant 0 : i32
    return %c0_i32, %c0_i32_0 : i32, i32
  }
  func.func @transform_11(%arg0: i32) -> (i32, i32, i32) {
    %c0_i32 = arith.constant 0 : i32
    %c0_i32_0 = arith.constant 0 : i32
    %c0_i32_1 = arith.constant 0 : i32
    return %arg0, %c0_i32, %c0_i32_0 : i32, i32, i32
  }
}

</mosaic_0001>

<bundles_post_ra>
// kernel: tpu_custom_call.1
= control target key start
LH: loop header
LB: loop body
LE: loop exit
PB: predicated region body
PF: predicated region fallthrough
CT: control target
= control target key end

     0   :  { %s2236_s0 = inlined_call_operand.hbm [shape: f32[2,8,96], index: 0, kind: input, shape index: {}]   ;;  %s2237_s1 = inlined_call_operand.hbm [shape: f32[2,32,64], index: 1, kind: input, shape index: {}]   ;;  %s2238_s2 = inlined_call_operand.vmem [shape: f32[2,1,32], index: 2, kind: input, shape index: {}]   ;;  %s2239_s3 = inlined_call_operand.hbm [shape: bf16[96,128], index: 3, kind: input, shape index: {}]   ;;  %s2240_s4 = inlined_call_operand.vmem [shape: f32[1,128], index: 4, kind: input, shape index: {}]   ;;  %s2241_s5 = inlined_call_operand.hbm [shape: bf16[128,128], index: 5, kind: input, shape index: {}]   ;;  %s2242_s6 = inlined_call_operand.vmem [shape: f32[1,128], index: 6, kind: input, shape index: {}]   ;;  %s2243_s7 = inlined_call_operand.hbm [shape: bf16[64,128], index: 7, kind: input, shape index: {}]   ;;  %s2244_s8 = inlined_call_operand.vmem [shape: f32[1,128], index: 8, kind: input, shape index: {}]   ;;  %s2245_s9 = inlined_call_operand.hbm [shape: bf16[128,128], index: 9, kind: input, shape index: {}]   ;;  %s2246_s10 = inlined_call_operand.vmem [shape: f32[1,128], index: 10, kind: input, shape index: {}]   ;;  %s2247_s11 = inlined_call_operand.hbm [shape: f32[2,8,32], index: 11, kind: output, shape index: {}]  }
   0x1   :  { %2252 = sst [smem:[#allocation20_spill]] %s2236_s0 }
   0x2   :  { %2253 = sst [smem:[#allocation21_spill]] %s2238_s2 }
   0x3   :  { %2254 = sst [smem:[#allocation22_spill]] %s2239_s3 }
   0x4   :  { %2255 = sst [smem:[#allocation23_spill]] %s2241_s5 }
   0x5   :  { %2256 = sst [smem:[#allocation24_spill]] %s2242_s6 }
   0x6   :  { %2257 = sst [smem:[#allocation25_spill]] %s2243_s7 }
   0x7   :  { %2258 = sst [smem:[#allocation26_spill]] %s2247_s11 }
   0x8   :  { %16 = vsyncpa [#allocation3], 0 }
   0x9   :  { %18 = vsyncpa [#allocation3 + $0x1], 0 }
   0xa   :  { %19 = vsyncpa [#allocation6], 0 }
   0xb   :  { %21 = vsyncpa [#allocation6 + $0x1], 0 }
   0xc   :  { %22 = vsyncpa [#allocation9], 0 }
   0xd   :  { %23 = vsyncpa [#allocation12], 0 }
   0xe   :  { %24 = vsyncpa [#allocation4], 0 }
   0xf   :  { %26 = vsyncpa [#allocation4 + $0x1], 0  ;;  %s1836_s17 = smov 0   ;;  %s1838_s18 = smov 0  }
  0x10   :  { %s1840_s19 = smov 0   ;;  %s1842_s20 = smov 0  }
  0x11 LB: > { %s1762_s21 = smov [#allocation7]   ;;  %s1857_s23 = sadd.s32 4294967295, %s1760_s20   ;;  %s1760_s20 = sphi %s1842_s20, %s2289_s20   ;;  %s1756_s19 = sphi %s1840_s19, %s2288_s19   ;;  %s1752_s18 = sphi %s1838_s18, %s2287_s18   ;;  %s1748_s17 = sphi %s1836_s17, %s2286_s17  }
  0x12   : > { %s321_s22 = sshll.u32 %s1762_s21, 4  ;;  %p1203_p0 = scmp.ge.s32.totalorder %s1760_s20, 1  ;;  %s1862_s22 = int_to_ptr.vmem [resolvable:$true] %s321_s22 }
  0x13   : > { %p2249_p1 = scmp.eq.s32.totalorder %s1857_s23, 0  ;;  %p309_p2 = scmp.lt.s32.totalorder %s1760_s20, 3 }
  0x14   : > { %s1763_s25 = smov [#allocation8]   ;;  %s1764_s28 = smov [#allocation10]  }
  0x15   : > { %p1864_p3 = pnand %p1203_p0, %p309_p2  ;;  %s337_s26 = sshll.u32 %s1763_s25, 4  ;;  %s1877_s26 = int_to_ptr.vmem [resolvable:$true] %s337_s26 }
  0x16   : > { %s353_s29 = sshll.u32 %s1764_s28, 4  ;;  %s2261_s3 = sld [smem:[#allocation22_spill]]  ;;  %s1879_s29 = int_to_ptr.vmem [resolvable:$true] %s353_s29 }
  0x17   : > { %s2259_s24 = scalar_select %p1864_p3, 1, 0 }
  0x18   : > { %p1393_p5 = pneg %p1864_p3 }
  0x1a   : > { %p1873_p6 = pnand %p1393_p5, %p2249_p1 }
  0x1c   : > { %s1506_s13 = scalar_lea.hbm %s2261_s3, 768  ;;  %p1889_p8 = pneg %p1873_p6 }
  0x1d   : > { %p1507_p7 = scmp.ne.s32.totalorder %s2261_s3, %s1506_s13  ;;  %p1513_p11 = scmp.lt.u32.totalorder %s1506_s13, %s2261_s3 }
  0x1f   : > { %p1509_p9 = pnand %p1889_p8, %p1507_p7 }
  0x21   : > { %p1510_p10 = pneg %p1509_p9 }
  0x23   : > { %p1515_p12 = pnand %p1513_p11, %p1510_p10 }
  0x25   : > { %1518 = shalt.err (!%p1515_p12)
}
  0x26   : > { %s1519_s28 = scalar_lea.vmem %s1862_s22, 768  ;;  %p1527_p5 = scmp.lt.s32.totalorder %s1862_s22, %s1862_s22 }
  0x27   : > { %p1520_p13 = scmp.ne.s32.totalorder %s1862_s22, %s1519_s28  ;;  %p1528_p4 = scmp.lt.s32.totalorder %s1519_s28, %s1519_s28 }
  0x29   : > { %p1522_p0 = pnand %p1520_p13, %p1889_p8  ;;  %p1529_p7 = por %p1528_p4, %p1527_p5 }
  0x2b   : > { %p1523_p2 = pneg %p1522_p0 }
  0x2d   : > { %p1530_p9 = pnand %p1529_p7, %p1523_p2 }
  0x2f   : > { %1533 = shalt.err (!%p1530_p9)
}
  0x30   : > { %s1765_s30 = smov 64   ;;  %s1766_s12 = smov 4  }
  0x31   : > { %1396 = dma.hbm_to_vmem [thread:$0]  (!%p1873_p6), %s2261_s3, 768, %s1862_s22, [#allocation6], %s1765_s30, %s1765_s30, %s1766_s12  }
  0x32   : > { %s2263_s5 = sld [smem:[#allocation23_spill]] }
  0x38   : > { %s1534_s25 = scalar_lea.hbm %s2263_s5, 1024 }
  0x39   : > { %p1535_p4 = scmp.ne.s32.totalorder %s2263_s5, %s1534_s25  ;;  %p1541_p12 = scmp.lt.u32.totalorder %s1534_s25, %s2263_s5 }
  0x3b   : > { %p1537_p10 = pnand %p1535_p4, %p1889_p8 }
  0x3d   : > { %p1538_p11 = pneg %p1537_p10 }
  0x3f   : > { %p1543_p13 = pnand %p1541_p12, %p1538_p11 }
  0x41   : > { %1546 = shalt.err (!%p1543_p13)
}
  0x42   : > { %s1547_s22 = scalar_lea.vmem %s1877_s26, 1024  ;;  %p1555_p7 = scmp.lt.s32.totalorder %s1877_s26, %s1877_s26 }
  0x43   : > { %p1548_p0 = scmp.ne.s32.totalorder %s1877_s26, %s1547_s22  ;;  %p1556_p9 = scmp.lt.s32.totalorder %s1547_s22, %s1547_s22 }
  0x45   : > { %p1550_p2 = pnand %p1548_p0, %p1889_p8  ;;  %p1557_p4 = por %p1556_p9, %p1555_p7 }
  0x47   : > { %p1551_p5 = pneg %p1550_p2 }
  0x49   : > { %p1558_p10 = pnand %p1557_p4, %p1551_p5 }
  0x4b   : > { %1561 = shalt.err (!%p1558_p10)
}
  0x4c   : > { %1399 = dma.hbm_to_vmem [thread:$0]  (!%p1873_p6), %s2263_s5, 1024, %s1877_s26, [#allocation9], %s1765_s30, %s1765_s30, %s1766_s12  }
  0x4d   : > { %s2264_s7 = sld [smem:[#allocation25_spill]] }
  0x53   : > { %s1562_s14 = scalar_lea.hbm %s2264_s7, 512 }
  0x54   : > { %p1563_p11 = scmp.ne.s32.totalorder %s2264_s7, %s1562_s14  ;;  %p1569_p0 = scmp.lt.u32.totalorder %s1562_s14, %s2264_s7 }
  0x56   : > { %p1565_p12 = pnand %p1563_p11, %p1889_p8 }
  0x58   : > { %p1566_p13 = pneg %p1565_p12 }
  0x5a   : > { %p1571_p2 = pnand %p1569_p0, %p1566_p13 }
  0x5c   : > { %1574 = shalt.err (!%p1571_p2)
}
  0x5d   : > { %s1575_s26 = scalar_lea.vmem %s1879_s29, 512  ;;  %p1583_p4 = scmp.lt.s32.totalorder %s1879_s29, %s1879_s29 }
  0x5e   : > { %p1576_p5 = scmp.ne.s32.totalorder %s1879_s29, %s1575_s26  ;;  %p1584_p10 = scmp.lt.s32.totalorder %s1575_s26, %s1575_s26 }
  0x60   : > { %p1578_p7 = pnand %p1576_p5, %p1889_p8  ;;  %p1585_p11 = por %p1584_p10, %p1583_p4 }
  0x62   : > { %p1579_p9 = pneg %p1578_p7 }
  0x64   : > { %p1586_p12 = pnand %p1585_p11, %p1579_p9 }
  0x66   : > { %1589 = shalt.err (!%p1586_p12)
}
  0x67   : > { %1402 = dma.hbm_to_vmem [thread:$0]  (!%p1873_p6), %s2264_s7, 512, %s1879_s29, [#allocation9], %s1765_s30, %s1765_s30, %s1766_s12  }
  0x68   : > { %s1767_s6 = smov [#allocation11]   ;;  %s1590_s15 = scalar_lea.hbm %s2245_s9, 1024 }
  0x69   : > { %s369_s11 = sshll.u32 %s1767_s6, 4  ;;  %p1591_p13 = scmp.ne.s32.totalorder %s2245_s9, %s1590_s15  ;;  %s370_s11 = int_to_ptr.vmem [resolvable:$true] %s369_s11 }
  0x6a   : > { %p1597_p5 = scmp.lt.u32.totalorder %s1590_s15, %s2245_s9 }
  0x6b   : > { %p1593_p0 = pnand %p1591_p13, %p1889_p8 }
  0x6d   : > { %p1594_p2 = pneg %p1593_p0 }
  0x6f   : > { %p1599_p7 = pnand %p1597_p5, %p1594_p2 }
  0x71   : > { %1602 = shalt.err (!%p1599_p7)
}
  0x72   : > { %s1603_s29 = scalar_lea.vmem %s370_s11, 1024  ;;  %p1611_p11 = scmp.lt.s32.totalorder %s370_s11, %s370_s11 }
  0x73   : > { %p1604_p9 = scmp.ne.s32.totalorder %s370_s11, %s1603_s29  ;;  %p1612_p12 = scmp.lt.s32.totalorder %s1603_s29, %s1603_s29 }
  0x75   : > { %p1606_p4 = pnand %p1604_p9, %p1889_p8  ;;  %p1613_p1 = por %p1612_p12, %p1611_p11 }
  0x77   : > { %p1607_p10 = pneg %p1606_p4 }
  0x79   : > { %p1614_p3 = pnand %p1613_p1, %p1607_p10 }
  0x7b   : > { %1617 = shalt.err (!%p1614_p3)
}
  0x7c   : > { %1405 = dma.hbm_to_vmem [thread:$0]  (!%p1873_p6), %s2245_s9, 1024, %s370_s11, [#allocation12], %s1765_s30, %s1765_s30, %s1766_s12  }
  0x7d   : > { %s1202_s27 = sadd.s32 4294967294, %s1760_s20   ;;  %s1988_s16 = sadd.s32 1, %s1760_s20  }
  0x7e   : > { %s36_s6 = ssub.s32 %s1760_s20, %s1988_s16  ;;  %s39_s13 = sadd.s32 1, %s1756_s19 }
  0x7f   : > { %p37_p1 = scmp.eq.s32.totalorder %s36_s6, 0  ;;  %p46_p3 = scmp.ne.s32.totalorder %s1756_s19, %s1752_s18 }
  0x80   : > { %p47_p8 = scmp.eq.s32.totalorder %s1760_s20, 0  ;;  %p52_p13 = scmp.ne.s32.totalorder %s1752_s18, %s1748_s17 }
  0x81   : > { %s1999_s14 = scalar_select %p37_p1, %s1756_s19, %s39_s13  }
  0x82   : > { %p2001_p0 = por %p47_p8, %p46_p3  ;;  %p2266_p2 = scmp.eq.s32.totalorder %s1857_s23, 0 }
  0x83   : > { %p296_p5 = scmp.eq.s32.totalorder %s1857_s23, 1  ;;  %p302_p7 = scmp.eq.s32.totalorder %s1202_s27, 1 }
  0x84   : > { %p2007_p6 = por %p2266_p2, %p52_p13  ;;  %p1421_p9 = scmp.lt.s32.totalorder %s1760_s20, 2 }
  0x85   : > { %s2014_s12 = sand.u32 1, %s1756_s19   ;;  %p2016_p4 = por %p296_p5, %p46_p3 }
  0x86   : > { %p2020_p10 = por %p302_p7, %p52_p13  ;;  %s1209_s25 = sshll.u32 %s2014_s12, 3 }
  0x87   : > { %s2268_s11 = scalar_select %p2016_p4, 1, 0 }
  0x88   : > { %s2269_s21 = scalar_select %p2020_p10, 1, 0 }
  0x89   : > { %s1210_s28 = sshll.u32 %s1760_s20, 7  ;;  %s2270_s0 = sld [smem:[#allocation20_spill]] }
  0x8a   : > { %s390_s2 = scalar_lea.vmem [#allocation2], %s1209_s25  ;;  %p2035_p11 = pnand %p1421_p9, %p2001_p0 }
  0x8b   : > { %s397_s27 = sshll.u32 %s390_s2, 4  ;;  %s1211_s13 = sshll.u32 %s2014_s12, 5  ;;  %s2031_s27 = int_to_ptr.vmem [resolvable:$true] %s397_s27 }
  0x8c   : > { %s387_s26 = scalar_lea.sflag [#allocation3], %s2014_s12  ;;  %p1620_p1 = pneg %p2035_p11 }
  0x8f   : > { %s2029_s22 = scalar_lea.hbm %s2270_s0, %s1210_s28  ;;  %s1623_s15 = scalar_lea.hbm %s2270_s0, 256 }
  0x90   : > { %s1618_s28 = scalar_lea.hbm %s2029_s22, 128  ;;  %p1624_p13 = scmp.lt.u32.totalorder %s2029_s22, %s2270_s0 }
  0x91   : > { %p1619_p12 = scmp.ne.s32.totalorder %s2029_s22, %s1618_s28  ;;  %p1625_p0 = scmp.lt.u32.totalorder %s1623_s15, %s1618_s28 }
  0x92   : > { %p1627_p5 = scmp.lt.u32.totalorder %s1618_s28, %s2029_s22 }
  0x93   : > { %p1621_p3 = pnand %p1620_p1, %p1619_p12  ;;  %p1626_p2 = por %p1625_p0, %p1624_p13 }
  0x95   : > { %p1622_p8 = pneg %p1621_p3  ;;  %p1628_p7 = por %p1627_p5, %p1626_p2 }
  0x97   : > { %p1629_p9 = pnand %p1628_p7, %p1622_p8 }
  0x99   : > { %1632 = shalt.err (!%p1629_p9)
}
  0x9a   : > { %s1633_s3 = scalar_lea.vmem %s2031_s27, 128  ;;  %s1768_s25 = smov [#allocation2]  }
  0x9b   : > { %p1634_p12 = scmp.ne.s32.totalorder %s2031_s27, %s1633_s3  ;;  %s1638_s29 = sshll.u32 %s1768_s25, 4  ;;  %s1639_s29 = int_to_ptr.vmem [resolvable:$false] %s1638_s29 }
  0x9c   : > { %s1640_s5 = scalar_lea.vmem %s1639_s29, 256  ;;  %p1641_p4 = scmp.lt.s32.totalorder %s2031_s27, %s1639_s29 }
  0x9d   : > { %p1636_p3 = pnand %p1634_p12, %p1620_p1  ;;  %p1642_p13 = scmp.lt.s32.totalorder %s1640_s5, %s1633_s3 }
  0x9f   : > { %p1637_p10 = pneg %p1636_p3  ;;  %p1643_p0 = por %p1642_p13, %p1641_p4 }
  0xa1   : > { %p1644_p2 = pnand %p1643_p0, %p1637_p10 }
  0xa3   : > { %1647 = shalt.err (!%p1644_p2)
}
  0xa4   : > { %1409 = dma.hbm_to_vmem [thread:$0]  (!%p2035_p11), %s2029_s22, 128, %s2031_s27, %s387_s26  }
  0xa5   : > { %s408_s28 = scalar_lea.vmem [#allocation5], %s1211_s13  ;;  %s1259_s2 = sshll.u32 %s1760_s20, 9 }
  0xa6   : > { %s415_s15 = sshll.u32 %s408_s28, 4  ;;  %s2075_s29 = scalar_lea.hbm %s2237_s1, %s1259_s2  ;;  %s2069_s15 = int_to_ptr.vmem [resolvable:$true] %s415_s15 }
  0xa7   : > { %s2272_s5 = sand.u32 1, %s1760_s20   ;;  %s1648_s7 = scalar_lea.hbm %s2075_s29, 512 }
  0xa8   : > { %s2079_s0 = scalar_lea.sflag [#allocation6], %s2272_s5  ;;  %p1649_p4 = scmp.ne.s32.totalorder %s2075_s29, %s1648_s7 }
  0xa9   : > { %s1653_s27 = scalar_lea.hbm %s2237_s1, 1024  ;;  %p1654_p5 = scmp.lt.u32.totalorder %s2075_s29, %s2237_s1 }
  0xaa   : > { %p1651_p10 = pnand %p1649_p4, %p1620_p1  ;;  %p1655_p7 = scmp.lt.u32.totalorder %s1653_s27, %s1648_s7 }
  0xab   : > { %p1657_p12 = scmp.lt.u32.totalorder %s1648_s7, %s2075_s29 }
  0xac   : > { %p1652_p8 = pneg %p1651_p10  ;;  %p1656_p9 = por %p1655_p7, %p1654_p5 }
  0xae   : > { %p1658_p3 = por %p1657_p12, %p1656_p9 }
  0xb0   : > { %p1659_p13 = pnand %p1658_p3, %p1652_p8 }
  0xb2   : > { %1662 = shalt.err (!%p1659_p13)
}
  0xb3   : > { %s1663_s28 = scalar_lea.vmem %s2069_s15, 512  ;;  %s1769_s2 = smov [#allocation5]  }
  0xb4   : > { %p1664_p0 = scmp.ne.s32.totalorder %s2069_s15, %s1663_s28  ;;  %s1668_s25 = sshll.u32 %s1769_s2, 4  ;;  %s1669_s25 = int_to_ptr.vmem [resolvable:$false] %s1668_s25 }
  0xb5   : > { %s1670_s3 = scalar_lea.vmem %s1669_s25, 1024  ;;  %p1671_p10 = scmp.lt.s32.totalorder %s2069_s15, %s1669_s25 }
  0xb6   : > { %p1666_p2 = pnand %p1664_p0, %p1620_p1  ;;  %p1672_p5 = scmp.lt.s32.totalorder %s1670_s3, %s1663_s28 }
  0xb8   : > { %p1667_p4 = pneg %p1666_p2  ;;  %p1673_p7 = por %p1672_p5, %p1671_p10 }
  0xba   : > { %p1674_p9 = pnand %p1673_p7, %p1667_p4 }
  0xbc   : > { %1677 = shalt.err (!%p1674_p9)
}
  0xbd   : > { %s1770_s7 = smov 128   ;;  %s1771_s5 = smov 8  }
  0xbe   : > { %1412 = dma.hbm_to_vmem [thread:$0]  (!%p2035_p11), %s2075_s29, 512, %s2069_s15, %s2079_s0, %s1770_s7, %s1770_s7, %s1771_s5  }
  0xbf   : > { %p2273_p1 = scmp.ne.s32.totalorder %s2259_s24, 0 }
  0xc0   : > { %s2108_s12 = sand.u32 (!%p2273_p1), 1, %s1752_s18  }
  0xc1   : > { %433 = sbr.rel (%p2273_p1) target bundleno = 1116 (0x45c), region = 64  ;;  %s1215_s22 = sshll.u32 (!%p2273_p1), %s2108_s12, 3 }
  0xc2   : > { %s436_s27 = scalar_lea.sflag (!%p2273_p1), [#allocation3], %s2108_s12  ;;  %s2114_s13 = scalar_lea.vmem (!%p2273_p1), [#allocation2], %s1215_s22 }
  0xc8   : > { %1723 = dma.done.wait (%p2007_p6), %s436_s27, 128  }
  0xc9   : > { %1725 = vsyncadd (%p2007_p6), %s436_s27, 4294967168  ;;  %s444_s0 = sand.u32 1, %s1857_s23   ;;  %s1216_s24 = sshll.u32 %s2108_s12, 5 }
  0xca   : > { %s445_s6 = scalar_lea.sflag [#allocation6], %s444_s0  ;;  %s2122_s15 = scalar_lea.vmem [#allocation5], %s1216_s24 }
  0xcb   : > { %1727 = dma.done.wait (%p2007_p6), %s445_s6, 512  }
  0xcc   : > { %1729 = vsyncadd (%p2007_p6), %s445_s6, 4294966784  ;;  %p2274_p11 = scmp.eq.s32.totalorder %s1857_s23, 0 }
  0xce   : > { %1731 = dma.done.wait (%p2274_p11), [#allocation6], 768   ;;  %p2275_p8 = pmov %p2274_p11 }
  0xd0   : > { %1733 = vsyncadd (%p2275_p8), [#allocation6], 4294966528  ;;  %p2276_p12 = pmov %p2275_p8 }
  0xd1   : > { %p2277_p3 = pmov %p2275_p8 }
  0xd2   : > { %1735 = dma.done.wait (%p2276_p12), [#allocation9], 1536  }
  0xd3   : > { %1737 = vsyncadd (%p2277_p3), [#allocation9], 4294965760  ;;  %p2278_p13 = pmov %p2277_p3 }
  0xd4   : > { %p2279_p0 = pmov %p2277_p3 }
  0xd5   : > { %1739 = dma.done.wait (%p2278_p13), [#allocation12], 1024  }
  0xd6   : > { %1741 = vsyncadd (%p2279_p0), [#allocation12], 4294966272  ;;  %v1772_v0 = vmov 0.0   ;;  %vm1773_vm0 = vmmov 0   ;;  %v1470_v1 = vld [vmem:[#allocation7] sm:$0xff]   ;;  %v1471_v2 = vld [vmem:[#allocation7 + $0x8] sm:$0xff]  }
  0xd7   : > { %1295 = vmatprep.subr.bf16.mxu0 %v1772_v0  ;;  %1307 = vmatprep.mubr.msk.bf16.mxu0 %vm1773_vm0, %v1772_v0  ;;  %v1472_v3 = vld [vmem:[#allocation7 + $0x10] sm:$0xff]   ;;  %v1473_v4 = vld [vmem:[#allocation7 + $0x18] sm:$0xff]   ;;  %v1474_v6 = vld [vmem:[#allocation7 + $0x20] sm:$0xff]   ;;  %vm589_vm1 = vcmask 785408   ;;  %vm797_vm2 = vcmask 523264   ;;  %s2280_s5 = sld [smem:[#allocation24_spill]] }
  0xd8   : > { %1311 = vmatprep.subr.bf16.mxu1 %v1772_v0  ;;  %1327 = vmatprep.mubr.msk.bf16.mxu1 %vm1773_vm0, %v1772_v0  ;;  %v1480_v5 = vld [vmem:[#allocation8] sm:$0xff]   ;;  %v1481_v7 = vld [vmem:[#allocation8 + $0x8] sm:$0xff]   ;;  %v1475_v8 = vld [vmem:[#allocation7 + $0x28] sm:$0xff]   ;;  %p511_p6 = scmp.lt.s32.totalorder %s1857_s23, 1  ;;  %s2281_s24 = sld [smem:[#allocation21_spill]]  ;;  %vm1046_vm5 = vcmask 261120  }
  0xd9   : > { %1296 = vmatpush3.bf16.msra.mxu0 %v1470_v1  ;;  %1312 = vmatpush3.bf16.msra.mxu1 %v1480_v5  ;;  %v515_v9 = vld [vmem:[%s2114_s13] sm:$0xff]  ;;  %v735_v11 = vld [vmem:[%s2122_s15] sm:$0xff]  ;;  %v736_v12 = vld [vmem:[%s2122_s15 + $0x8] sm:$0xff]  ;;  %s510_s30 = scalar_lea.vmem [#allocation13], %s1215_s22  ;;  %s2282_s2 = sld [smem:[#allocation26_spill]] }
  0xda   : > { %1297 = vmatprep.subr.bf16.mxu0 %v1772_v0  ;;  %1313 = vmatprep.subr.bf16.mxu1 %v1772_v0  ;;  %v1476_v10 = vld [vmem:[#allocation10] sm:$0xff]   ;;  %v1482_v13 = vld [vmem:[#allocation8 + $0x10] sm:$0xff]   ;;  %v546_v14 = vpack.c.bf16 %v515_v9, %v515_v9  ;;  %v1477_v15 = vld [vmem:[#allocation10 + $0x8] sm:$0xff]   ;;  %v765_v17 = vpack.c.bf16 %v736_v12, %v735_v11  ;;  %s512_s27 = scalar_select %p511_p6, %s1857_s23, 1 }
  0xdb   : > { %v1483_v16 = vld [vmem:[#allocation8 + $0x18] sm:$0xff]   ;;  %v1478_v18 = vld [vmem:[#allocation10 + $0x10] sm:$0xff]   ;;  %v1484_v19 = vld [vmem:[#allocation8 + $0x20] sm:$0xff]   ;;  %s1062_s29 = sshll.u32 %s510_s30, 4  ;;  %p2283_p4 = scmp.ne.s32.totalorder %s2268_s11, 0  ;;  %s2194_s29 = int_to_ptr.vmem [resolvable:$true] %s1062_s29 }
  0xdc   : > { %v1479_v20 = vld [vmem:[#allocation10 + $0x18] sm:$0xff]   ;;  %v1485_v21 = vld [vmem:[#allocation8 + $0x28] sm:$0xff]   ;;  %v737_v22 = vld [vmem:[%s2122_s15 + $0x10] sm:$0xff]  ;;  %s1678_s3 = scalar_lea.vmem %s2194_s29, 128  ;;  %s1775_s22 = smov [#allocation13]  }
  0xdd   : > { %1298 = vmatpush3.bf16.msra.mxu0 %v1471_v2  ;;  %1314 = vmatpush3.bf16.msra.mxu1 %v1481_v7  ;;  %v738_v23 = vld [vmem:[%s2122_s15 + $0x18] sm:$0xff]  ;;  %v1486_v24 = vld [vmem:[#allocation8 + $0x30] sm:$0xff]   ;;  %v1487_v26 = vld [vmem:[#allocation8 + $0x38] sm:$0xff]   ;;  %s1256_s15 = sshll.u32 %s1857_s23, 7  ;;  %s1049_s23 = scalar_lea.sflag [#allocation4], %s2108_s12 }
  0xde   : > { %1299 = vmatprep.subr.bf16.mxu0 %v1772_v0  ;;  %1315 = vmatprep.subr.bf16.mxu1 %v1772_v0  ;;  %v766_v25 = vpack.c.bf16 %v738_v23, %v737_v22  ;;  %v1488_v27 = vld [vmem:[#allocation11] sm:$0xff]   ;;  %v1489_v36 = vld [vmem:[#allocation11 + $0x8] sm:$0xff]   ;;  %v1490_v37 = vld [vmem:[#allocation11 + $0x10] sm:$0xff]   ;;  %s513_s6 = scalar_lea.vmem %s2281_s24, %s512_s27  ;;  %p1679_p2 = scmp.ne.s32.totalorder %s2194_s29, %s1678_s3 }
  0xdf   : > { %v1222_v28 = vld [vmem:[%s2240_s4] ss:$0 sm:$0xff]  ;;  %v1491_v38 = vld [vmem:[#allocation11 + $0x18] sm:$0xff]   ;;  %v1493_v52 = vld [vmem:[#allocation11 + $0x28] sm:$0xff]   ;;  %s2192_s25 = scalar_lea.hbm %s2282_s2, %s1256_s15  ;;  %s1682_s7 = sshll.u32 %s1775_s22, 4  ;;  %s1683_s7 = int_to_ptr.vmem [resolvable:$false] %s1682_s7 }
  0xe0   : > { %v1239_v39 = vld [vmem:[%s2244_s8] ss:$0 sm:$0xff]  ;;  %v1494_v56 = vld [vmem:[#allocation11 + $0x30] sm:$0xff]   ;;  %v1495_v57 = vld [vmem:[#allocation11 + $0x38] sm:$0xff]   ;;  %p1680_p10 = pnand %p1679_p2, %p2283_p4  ;;  %p1685_p7 = scmp.lt.s32.totalorder %s2194_s29, %s1683_s7 }
  0xe1   : > { %1300 = vmatpush3.bf16.msra.mxu0 %v1472_v3  ;;  %1316 = vmatpush3.bf16.msra.mxu1 %v1482_v13  ;;  %v1492_v41 = vld [vmem:[#allocation11 + $0x20] sm:$0xff]  }
  0xe2   : > { %1301 = vmatprep.subr.bf16.mxu0 %v1772_v0  ;;  %1317 = vmatprep.subr.bf16.mxu1 %v1772_v0  ;;  %v1246_v62 = vld [vmem:[%s2246_s10] ss:$0 sm:$0xff]  ;;  %p1681_p5 = pneg %p1680_p10 }
  0xe5   : > { %1302 = vmatpush3.bf16.msra.mxu0 %v1473_v4  ;;  %1318 = vmatpush3.bf16.msra.mxu1 %v1483_v16 }
  0xe6   : > { %1303 = vmatprep.subr.bf16.mxu0 %v1772_v0  ;;  %1319 = vmatprep.subr.bf16.mxu1 %v1772_v0 }
  0xe9   : > { %1304 = vmatpush3.bf16.msra.mxu0 %v1474_v6  ;;  %1320 = vmatpush3.bf16.msra.mxu1 %v1484_v19 }
  0xea   : > { %1305 = vmatprep.subr.bf16.mxu0 %v1772_v0  ;;  %1321 = vmatprep.subr.bf16.mxu1 %v1772_v0 }
  0xed   : > { %1306 = vmatpush3.bf16.msra.mxu0 %v1475_v8  ;;  %1322 = vmatpush3.bf16.msra.mxu1 %v1485_v21 }
  0xee   : > { %1331 = vmatprep.subr.bf16.mxu0 %v1476_v10  ;;  %1323 = vmatprep.subr.bf16.mxu1 %v1772_v0 }
  0xf0   : > { %1308 = vmatmul.mubr.msk.bf16.vlgmr.msra.gmra.mrb[0].mxu0 %vm589_vm1, %v546_v14 }
  0xf1   : > { %1332 = vmatpush3.bf16.msra.mxu0 %v1476_v10  ;;  %1339 = vmatprep.mubr.msk.bf16.mxu0 %vm797_vm2, %v765_v17  ;;  %v1230_v10 = vld [vmem:[%s2280_s5] ss:$0 sm:$0xff]  ;;  %s1684_s5 = scalar_lea.vmem %s1683_s7, 256 }
  0xf2   : > { %1333 = vmatprep.subr.bf16.mxu0 %v1477_v15  ;;  %1324 = vmatpush3.bf16.msra.mxu1 %v1486_v24  ;;  %p1686_p9 = scmp.lt.s32.totalorder %s1684_s5, %s1678_s3 }
  0xf3   : > { %1325 = vmatprep.subr.bf16.mxu1 %v1772_v0 }
  0xf4   : > { %p1687_p1 = por %p1686_p9, %p1685_p7 }
  0xf5   : > { %1334 = vmatpush3.bf16.msra.mxu0 %v1477_v15 }
  0xf6   : > { %1335 = vmatprep.subr.bf16.mxu0 %v1478_v18  ;;  %1326 = vmatpush3.bf16.msra.mxu1 %v1487_v26  ;;  %p1688_p11 = pnand %p1687_p1, %p1681_p5 }
  0xf7   : > { %1343 = vmatprep.subr.bf16.mxu1 %v1488_v27 }
  0xf9   : > { %1336 = vmatpush3.bf16.msra.mxu0 %v1478_v18 }
  0xfa   : > { %1337 = vmatprep.subr.bf16.mxu0 %v1479_v20 }
  0xfd   : > { %1338 = vmatpush3.bf16.msra.mxu0 %v1479_v20 }
  0xfe   : > { %1363 = vmatprep.subr.bf16.mxu0 %v1772_v0 }
 0x100   : > { %1340 = vmatmul.mubr.msk.bf16.vlgmr.msra.gmra.mrb[4].mxu0 %vm797_vm2, %v766_v25 }
 0x101   : > { %1367 = vmatprep.mubr.msk.bf16.mxu0 %vm1773_vm0, %v1772_v0 }
 0x1c3   : > { %v627_v29 = vpop.f32.mrb[0].mxu0 }
 0x1c4   : > { %v628_v30 = vadd.f32 %v1222_v28, %v627_v29  ;;  %v1309_v31 = vpop.f32.mrb[1].mxu0 }
 0x1c5   : > { %v630_v32 = vpop.f32.mrb[2].mxu0 }
 0x1c6   : > { %v633_v33 = vmax.f32 %v628_v30, 0.0  ;;  %v1310_v34 = vpop.f32.mrb[3].mxu0 }
 0x1c8   : > { %v634_v35 = vpack.c.bf16 %v633_v33, %v633_v33 }
 0x1ca   : > { %1328 = vmatmul.mubr.bf16.vlgmr.msra.gmra.mrb[0].mxu1 %v634_v35 }
 0x1cb   : > { %1344 = vmatpush3.bf16.msra.mxu1 %v1488_v27 }
 0x1cc   : > { %1345 = vmatprep.subr.bf16.mxu1 %v1489_v36 }
 0x1cf   : > { %1346 = vmatpush3.bf16.msra.mxu1 %v1489_v36 }
 0x1d0   : > { %1347 = vmatprep.subr.bf16.mxu1 %v1490_v37 }
 0x1d3   : > { %1348 = vmatpush3.bf16.msra.mxu1 %v1490_v37  ;;  %v1341_v40 = vpop.f32.mrb[4].mxu0 }
 0x1d4   : > { %1349 = vmatprep.subr.bf16.mxu1 %v1491_v38  ;;  %v847_v42 = vadd.f32 %v1341_v40, %v1239_v39  ;;  %v838_v43 = vpop.f32.mrb[5].mxu0 }
 0x1d5   : > { %v839_v44 = vadd.f32 %v1239_v39, %v838_v43  ;;  %v1342_v45 = vpop.f32.mrb[6].mxu0 }
 0x1d6   : > { %v855_v46 = vmax.f32 %v847_v42, 0.0  ;;  %v850_v47 = vadd.f32 %v1342_v45, %v1239_v39  ;;  %v841_v48 = vpop.f32.mrb[7].mxu0 }
 0x1d7   : > { %1350 = vmatpush3.bf16.msra.mxu1 %v1491_v38  ;;  %v853_v49 = vmax.f32 %v839_v44, 0.0  ;;  %v842_v50 = vadd.f32 %v1239_v39, %v841_v48  ;;  %v1032_v38 = vlaneseq  ;;  %v1029_v39 = vld [vmem:[%s513_s6] sm:$0x1] }
 0x1d8   : > { %1351 = vmatprep.subr.bf16.mxu1 %v1492_v41  ;;  %v856_v51 = vmax.f32 %v850_v47, 0.0  ;;  %vm1030_vm3 = vcmp.eq.f32.partialorder %v1029_v39, 0.0 }
 0x1d9   : > { %v854_v53 = vmax.f32 %v842_v50, 0.0  ;;  %v1033_v40 = vshrl.u32 %v1032_v38, 7 }
 0x1da   : > { %v858_v54 = vpack.c.bf16 %v856_v51, %v855_v46 }
 0x1db   : > { %1352 = vmatpush3.bf16.msra.mxu1 %v1492_v41  ;;  %v857_v55 = vpack.c.bf16 %v854_v53, %v853_v49  ;;  %v1774_v41 = vmov 0  }
 0x1dc   : > { %1353 = vmatprep.subr.bf16.mxu1 %v1493_v52  ;;  %v1038_v42 = vsel %vm1030_vm3, 1, %v1774_v41 }
 0x1dd   : > { %1359 = vmatprep.mubr.bf16.mxu1 %v857_v55 }
 0x1df   : > { %1354 = vmatpush3.bf16.msra.mxu1 %v1493_v52 }
 0x1e0   : > { %1355 = vmatprep.subr.bf16.mxu1 %v1494_v56 }
 0x1e3   : > { %1356 = vmatpush3.bf16.msra.mxu1 %v1494_v56 }
 0x1e4   : > { %1357 = vmatprep.subr.bf16.mxu1 %v1495_v57 }
 0x1e7   : > { %1358 = vmatpush3.bf16.msra.mxu1 %v1495_v57 }
 0x1ea   : > { %1360 = vmatmul.mubr.bf16.vlgmr.msra.gmra.mrb[4].mxu1 %v858_v54 }
 0x29d   : > { %v723_v58 = vpop.f32.mrb[0].mxu1 }
 0x29e   : > { %v1329_v59 = vpop.f32.mrb[1].mxu1  ;;  %v724_v12 = vadd.f32 %v1230_v10, %v723_v58 }
 0x29f   : > { %v726_v60 = vpop.f32.mrb[2].mxu1 }
 0x2a0   : > { %v1330_v61 = vpop.f32.mrb[3].mxu1  ;;  %v729_v14 = vmul.f32 %v724_v12, %v724_v12 }
 0x2bd   : > { %v1361_v63 = vpop.f32.mrb[4].mxu1 }
 0x2be   : > { %v956_v1 = vadd.f32 %v1361_v63, %v1246_v62  ;;  %v947_v2 = vpop.f32.mrb[5].mxu1 }
 0x2bf   : > { %v948_v3 = vadd.f32 %v1246_v62, %v947_v2  ;;  %v1362_v4 = vpop.f32.mrb[6].mxu1 }
 0x2c0   : > { %v959_v5 = vadd.f32 %v1362_v4, %v1246_v62  ;;  %v950_v6 = vpop.f32.mrb[7].mxu1  ;;  %v964_v7 = vmul.f32 %v956_v1, %v956_v1 }
 0x2c1   : > { %v951_v8 = vadd.f32 %v1246_v62, %v950_v6  ;;  %v962_v9 = vmul.f32 %v948_v3, %v948_v3 }
 0x2c2   : > { %970 = vadd.xlane.f32.xlu1 %v964_v7  ;;  %v965_v11 = vmul.f32 %v959_v5, %v959_v5 }
 0x2c3   : > { %966 = vadd.xlane.f32.xlu0 %v962_v9  ;;  %v963_v13 = vmul.f32 %v951_v8, %v951_v8 }
 0x2c6   : > { %972 = vadd.xlane.f32.xlu1 %v965_v11 }
 0x2c7   : > { %968 = vadd.xlane.f32.xlu0 %v963_v13 }
 0x2cb   : > { %730 = vadd.xlane.f32.xlu0 %v729_v14 }
 0x34f   : > { %v971_v15 = vpop.xlane.xlu1 %970 }
 0x350   : > { %v967_v16 = vpop.xlane.xlu0 %966  ;;  %v976_v22 = vmax.f32 %v971_v15, 1e-24 }
 0x351   : > { %v974_v17 = vmax.f32 %v967_v16, 1e-24 }
 0x353   : > { %v973_v18 = vpop.xlane.xlu1 %972  ;;  %1496 = vrsqrt.f32 %v974_v17 }
 0x354   : > { %v969_v19 = vpop.xlane.xlu0 %968  ;;  %v977_v21 = vmax.f32 %v973_v18, 1e-24 }
 0x355   : > { %v975_v20 = vmax.f32 %v969_v19, 1e-24 }
 0x357   : > { %1498 = vrsqrt.f32 %v975_v20 }
 0x358   : > { %1500 = vrsqrt.f32 %v977_v21  ;;  %v731_v23 = vpop.xlane.xlu0 %730 }
 0x359   : > { %1502 = vrsqrt.f32 %v976_v22  ;;  %v732_v24 = vmax.f32 %v731_v23, 1e-24 }
 0x35b   : > { %1504 = vrsqrt.f32 %v732_v24 }
 0x35d   : > { %v1497_v25 = vpop.eup %1496 }
 0x35e   : > { %v982_v27 = vmul.f32 %v1497_v25, %v948_v3 }
 0x361   : > { %v1499_v26 = vpop.eup %1498 }
 0x362   : > { %v983_v28 = vmul.f32 %v1499_v26, %v951_v8  ;;  %v1501_v30 = vpop.eup %1500 }
 0x363   : > { %v1503_v31 = vpop.eup %1502  ;;  %v985_v32 = vmul.f32 %v1501_v30, %v959_v5 }
 0x364   : > { %v987_v29 = vpack.c.bf16 %v983_v28, %v982_v27  ;;  %v984_v33 = vmul.f32 %v1503_v31, %v956_v1 }
 0x365   : > { %v1505_v34 = vpop.eup %1504 }
 0x366   : > { %1364 = vmatpush3.bf16.xpose.msra.mxu0 %v987_v29  ;;  %v988_v35 = vpack.c.bf16 %v985_v32, %v984_v33  ;;  %v734_v36 = vmul.f32 %v1505_v34, %v724_v12 }
 0x367   : > { %1365 = vmatprep.subr.bf16.mxu0 %v1772_v0  ;;  %v1034_v0 = vsub.s32 0, %v1033_v40 }
 0x368   : > { %v986_v37 = vpack.c.bf16 %v734_v36, %v734_v36 }
 0x369   : > { %v1042_v43 = vrot.slane %v1038_v42, %v1034_v0  ;;  %v1035_v44 = vrot.slane %v1029_v39, %v1034_v0 }
 0x36b   : > { %vm1043_vm4 = vcmp.eq.s32.totalorder %v1042_v43, 1 }
 0x36e   : > { %1366 = vmatpush3.bf16.xpose.msra.mxu0 %v988_v35 }
 0x375   : > { %1368 = vmatmul.mubr.bf16.vlgmr.msra.gmra.mrb[8].mxu0 %v986_v37 }
 0x448   : > { %v1023_v45 = vpop.f32.mrb[8].mxu0 }
 0x449   : > { %v1037_v46 = vmul.f32 %v1035_v44, %v1023_v45  ;;  %v1369_v47 = vpop.f32.mrb[9].mxu0 }
 0x44a   : > { %v1026_v48 = vpop.f32.mrb[10].mxu0 }
 0x44b   : > { %v1044_v49 = vsel %vm1043_vm4, -1.0, %v1037_v46  ;;  %v1370_v50 = vpop.f32.mrb[11].mxu0 }
 0x44c   : > { %v1045_v51 = vmax.f32 %v1044_v49, 0.0 }
 0x44e   : > { %1047 = vst.msk [vmem:[%s510_s30] sm:$0xff] %vm1046_vm5, %v1045_v51 }
 0x44f   : > { %1691 = shalt.err (!%p1688_p11)
}
 0x450   : > { %s1692_s12 = scalar_lea.hbm %s2192_s25, 128  ;;  %s1696_s0 = scalar_lea.hbm %s2282_s2, 256 }
 0x451   : > { %p1693_p8 = scmp.ne.s32.totalorder %s2192_s25, %s1692_s12  ;;  %p1697_p13 = scmp.lt.u32.totalorder %s2192_s25, %s2282_s2 }
 0x452   : > { %p1698_p0 = scmp.lt.u32.totalorder %s1696_s0, %s1692_s12  ;;  %p1700_p2 = scmp.lt.u32.totalorder %s1692_s12, %s2192_s25 }
 0x453   : > { %p1694_p12 = pnand %p1693_p8, %p2283_p4 }
 0x454   : > { %p1699_p6 = por %p1698_p0, %p1697_p13 }
 0x455   : > { %p1695_p3 = pneg %p1694_p12 }
 0x456   : > { %p1701_p10 = por %p1700_p2, %p1699_p6 }
 0x458   : > { %p1702_p5 = pnand %p1701_p10, %p1695_p3 }
 0x45a   : > { %1705 = shalt.err (!%p1702_p5)
}
 0x45b   : > { %1391 = dma.vmem_to_hbm [thread:$0]  (%p2283_p4), %s2194_s29, 128, %s2192_s25, %s1049_s23  }
 0x45c PF: > { %s1074_s15 = sand.u32 1, %s1748_s17   ;;  %p2284_p7 = scmp.ne.s32.totalorder %s2269_s21, 0 }
 0x45d   : > { %p2285_p9 = scmp.ge.s32.totalorder %s1760_s20, 2  ;;  %s1075_s30 = scalar_lea.sflag [#allocation4], %s1074_s15 }
 0x45f   : > { %p1414_p1 = pnand %p2285_p9, %p2284_p7 }
 0x461   : > { %1743 = dma.done.wait (!%p1414_p1), %s1075_s30, 128  }
 0x462   : > { %1745 = vsyncadd (!%p1414_p1), %s1075_s30, 4294967168  ;;  %p29_p11 = scmp.ge.s32.totalorder %s1988_s16, 4   ;;  %s2286_s17 = smov %s1752_s18 }
 0x463   : > { %s2287_s18 = smov %s1756_s19  ;;  %s2288_s19 = smov %s1999_s14 }
 0x464   : > { %s2289_s20 = smov %s1988_s16  ;;  %31 = sbr.rel (!%p29_p11) target bundleno = 17 (0x11), region = 141 }
 0x46b   :  { %1080 = vsyncpa [#allocation3], 1 }
 0x46c   :  { %1082 = vsyncpa [#allocation3 + $0x1], 1 }
 0x46d   :  { %1083 = vsyncpa [#allocation6], 1 }
 0x46e   :  { %1085 = vsyncpa [#allocation6 + $0x1], 1 }
 0x46f   :  { %1086 = vsyncpa [#allocation9], 1 }
 0x470   :  { %1087 = vsyncpa [#allocation12], 1 }
 0x471   :  { %1088 = vsyncpa [#allocation4], 1 }
 0x472   :  { %1090 = vsyncpa [#allocation4 + $0x1], 1 }

</bundles_post_ra>
